<compile_context>
chip_gen: v5e
topology: v5e:2x2
jax: 0.10.0
libtpu: 0.0.40
codegen_flags: <defaults>
</compile_context>

<pallas_src>
import jax
import jax.numpy as jnp
from jax.experimental import pallas as pl
from jax.experimental.pallas import tpu as pltpu


def wine_mlp_kernel(x_ref,
                    w1_ref, b1_ref,
                    w2_ref, b2_ref,
                    w3_ref, b3_ref,
                    w4_ref, b4_ref,
                    o_ref):
    # Layer 1: (tb, 11) @ (11, 256) in f32 (tiny K; keeps accuracy, avoids a
    # host-side bf16 cast/copy of x).
    h = jnp.dot(x_ref[...], w1_ref[...],
                preferred_element_type=jnp.float32) + b1_ref[...]
    h = jnp.maximum(h, 0.0)

    # Layer 2: (tb, 256) @ (256, 128)   [64 zero-padded to 128 lanes]
    h = jnp.dot(h.astype(jnp.bfloat16), w2_ref[...],
                preferred_element_type=jnp.float32) + b2_ref[...]
    h = jnp.maximum(h, 0.0)

    # Layer 3: (tb, 128) @ (128, 128)   [32 zero-padded to 128 lanes]
    h = jnp.dot(h.astype(jnp.bfloat16), w3_ref[...],
                preferred_element_type=jnp.float32) + b3_ref[...]
    h = jnp.maximum(h, 0.0)

    # Layer 4: (tb, 128) @ (128, 16)    [9 zero-padded to 16 output lanes]
    h = jnp.dot(h.astype(jnp.bfloat16), w4_ref[...],
                preferred_element_type=jnp.float32) + b4_ref[...]

    o_ref[...] = h.astype(o_ref.dtype)


def _pad_to(a, shape):
    pads = [(0, t - s) for s, t in zip(a.shape, shape)]
    return jnp.pad(a, pads)


def wine_network_forward(x, params, *, tile_b=2048):
    """x: (batch, 11) float32.  params: dict with natural (in, out) shapes."""
    batch, feat = x.shape
    n_out = params["w4"].shape[1]          # 9
    out_pad = 16                           # 9 -> 16 output lanes

    # Batch tile: multiple of 128 (bf16 sublane packing / full MXU M passes),
    # capped at tile_b (default 2048 fits v5e's 16 MiB scoped-VMEM default).
    tb = min(tile_b, -(-batch // 128) * 128)
    padded_batch = -(-batch // tb) * tb

    x32 = x.astype(jnp.float32)
    if padded_batch != batch:
        x32 = jnp.pad(x32, ((0, padded_batch - batch), (0, 0)))

    # f32 layer-1 params; bf16 weights (f32 biases) for layers 2-4.
    # Zero-pad sub-128 lane dims; padded columns stay exactly zero through
    # bias add + ReLU, so the final slice recovers the exact result.
    w1 = params["w1"].astype(jnp.float32)                            # (11, 256)
    b1 = params["b1"].astype(jnp.float32)                            # (1, 256)
    w2 = _pad_to(params["w2"].astype(jnp.bfloat16), (256, 128))      # (256,64)->(256,128)
    b2 = _pad_to(params["b2"].astype(jnp.float32), (1, 128))
    w3 = _pad_to(params["w3"].astype(jnp.bfloat16), (128, 128))      # (64,32)->(128,128)
    b3 = _pad_to(params["b3"].astype(jnp.float32), (1, 128))
    w4 = _pad_to(params["w4"].astype(jnp.bfloat16), (128, out_pad))  # (32,9)->(128,16)
    b4 = _pad_to(params["b4"].astype(jnp.float32), (1, out_pad))

    const = lambda i: (0, 0)   # weights/biases resident across the batch grid

    out = pl.pallas_call(
        wine_mlp_kernel,
        out_shape=jax.ShapeDtypeStruct((padded_batch, out_pad), jnp.float32),
        grid=(padded_batch // tb,),
        in_specs=[
            pl.BlockSpec((tb, feat), lambda i: (i, 0)),   # x tile streams (f32)
            pl.BlockSpec((feat, 256), const),             # w1 (f32)
            pl.BlockSpec((1, 256), const),                # b1
            pl.BlockSpec((256, 128), const),              # w2 (padded, bf16)
            pl.BlockSpec((1, 128), const),                # b2 (padded)
            pl.BlockSpec((128, 128), const),              # w3 (padded, bf16)
            pl.BlockSpec((1, 128), const),                # b3 (padded)
            pl.BlockSpec((128, out_pad), const),          # w4 (padded, bf16)
            pl.BlockSpec((1, out_pad), const),            # b4 (padded)
        ],
        out_specs=pl.BlockSpec((tb, out_pad), lambda i: (i, 0)),
        compiler_params=pltpu.CompilerParams(
            dimension_semantics=("parallel",)),
    )(x32, w1, b1, w2, b2, w3, b3, w4, b4)

    return out[:batch, :n_out]


def init_params(key):
    """Deterministic init matching the nn.Linear shapes (stored as (in, out))."""
    dims = [(11, 256), (256, 64), (64, 32), (32, 9)]
    params = {}
    for i, (fan_in, fan_out) in enumerate(dims, start=1):
        key, kw, kb = jax.random.split(key, 3)
        bound = 1.0 / jnp.sqrt(fan_in)
        params[f"w{i}"] = jax.random.uniform(
            kw, (fan_in, fan_out), jnp.float32, -bound, bound)
        params[f"b{i}"] = jax.random.uniform(
            kb, (1, fan_out), jnp.float32, -bound, bound)
    return params


if __name__ == "__main__":
    key = jax.random.PRNGKey(0)
    key, kx = jax.random.split(key)

    batch = 8
    x = jax.random.normal(kx, (batch, 11), jnp.float32)

    params = init_params(key)

    out = wine_network_forward(x, params)
    out = jax.block_until_ready(out)

    # Reference check in plain JAX f32 (kernel is f32 layer-1, bf16/f32-acc
    # layers 2-4, so tolerances are deliberately widened).
    h = x
    for i in range(1, 5):
        h = h @ params[f"w{i}"] + params[f"b{i}"]
        if i < 4:
            h = jnp.maximum(h, 0.0)

    assert out.shape == (batch, 9)
    assert jnp.allclose(out, h, atol=5e-2, rtol=5e-2), (
        f"max abs err {float(jnp.max(jnp.abs(out - h)))}")

    print("KERNEL_OK")
</pallas_src>

<mosaic_0001>
module attributes {stable_mosaic.version = 11 : i64} {
  func.func @wine_mlp_kernel(%arg0: i32, %arg1: memref<128x11xf32, #tpu.memory_space<vmem>>, %arg2: memref<11x256xf32, #tpu.memory_space<vmem>>, %arg3: memref<1x256xf32, #tpu.memory_space<vmem>>, %arg4: memref<256x128xbf16, #tpu.memory_space<vmem>>, %arg5: memref<1x128xf32, #tpu.memory_space<vmem>>, %arg6: memref<128x128xbf16, #tpu.memory_space<vmem>>, %arg7: memref<1x128xf32, #tpu.memory_space<vmem>>, %arg8: memref<128x16xbf16, #tpu.memory_space<vmem>>, %arg9: memref<1x16xf32, #tpu.memory_space<vmem>>, %arg10: memref<128x16xf32, #tpu.memory_space<vmem>>) attributes {dimension_semantics = [#tpu.dimension_semantics<parallel>], iteration_bounds = array<i64: 1>, scalar_prefetch = 0 : i64, scratch_operands = 0 : i64, tpu.core_type = #tpu.core_type<tc>, window_params = [{transform_indices = @transform_0, window_bounds = array<i64: 128, 11>}, {pipeline_mode = #tpu.pipeline_mode<synchronous>, transform_indices = @transform_1, window_bounds = array<i64: 11, 256>}, {pipeline_mode = #tpu.pipeline_mode<synchronous>, transform_indices = @transform_2, window_bounds = array<i64: 1, 256>}, {pipeline_mode = #tpu.pipeline_mode<synchronous>, transform_indices = @transform_3, window_bounds = array<i64: 256, 128>}, {pipeline_mode = #tpu.pipeline_mode<synchronous>, transform_indices = @transform_4, window_bounds = array<i64: 1, 128>}, {pipeline_mode = #tpu.pipeline_mode<synchronous>, transform_indices = @transform_5, window_bounds = array<i64: 128, 128>}, {pipeline_mode = #tpu.pipeline_mode<synchronous>, transform_indices = @transform_6, window_bounds = array<i64: 1, 128>}, {pipeline_mode = #tpu.pipeline_mode<synchronous>, transform_indices = @transform_7, window_bounds = array<i64: 128, 16>}, {pipeline_mode = #tpu.pipeline_mode<synchronous>, transform_indices = @transform_8, window_bounds = array<i64: 1, 16>}, {transform_indices = @transform_9, window_bounds = array<i64: 128, 16>}]} {
    %c0 = arith.constant 0 : index
    %c0_0 = arith.constant 0 : index
    %0 = vector.load %arg1[%c0, %c0_0] : memref<128x11xf32, #tpu.memory_space<vmem>>, vector<128x11xf32>
    %c0_1 = arith.constant 0 : index
    %c0_2 = arith.constant 0 : index
    %1 = vector.load %arg2[%c0_1, %c0_2] : memref<11x256xf32, #tpu.memory_space<vmem>>, vector<11x256xf32>
    %cst = arith.constant dense<0.000000e+00> : vector<128x256xf32>
    %2 = tpu.matmul %0, %1, %cst {dimension_numbers = #tpu.dot_dimension_numbers<[1], [0], [0], [1], [0, 0, 1, 1], [], []>} : vector<128x11xf32>, vector<11x256xf32>, vector<128x256xf32> -> vector<128x256xf32>
    %c0_3 = arith.constant 0 : index
    %c0_4 = arith.constant 0 : index
    %3 = vector.load %arg3[%c0_3, %c0_4] : memref<1x256xf32, #tpu.memory_space<vmem>>, vector<1x256xf32>
    %4 = vector.broadcast %3 : vector<1x256xf32> to vector<128x256xf32>
    %5 = arith.addf %2, %4 : vector<128x256xf32>
    %cst_5 = arith.constant 0.000000e+00 : f32
    %6 = vector.broadcast %cst_5 : f32 to vector<128x256xf32>
    %7 = arith.maximumf %5, %6 : vector<128x256xf32>
    %8 = arith.truncf %7 : vector<128x256xf32> to vector<128x256xbf16>
    %c0_6 = arith.constant 0 : index
    %c0_7 = arith.constant 0 : index
    %9 = vector.load %arg4[%c0_6, %c0_7] : memref<256x128xbf16, #tpu.memory_space<vmem>>, vector<256x128xbf16>
    %cst_8 = arith.constant dense<0.000000e+00> : vector<128x128xf32>
    %10 = tpu.matmul %8, %9, %cst_8 {dimension_numbers = #tpu.dot_dimension_numbers<[1], [0], [0], [1], [0, 0, 1, 1], [], []>} : vector<128x256xbf16>, vector<256x128xbf16>, vector<128x128xf32> -> vector<128x128xf32>
    %c0_9 = arith.constant 0 : index
    %c0_10 = arith.constant 0 : index
    %11 = vector.load %arg5[%c0_9, %c0_10] : memref<1x128xf32, #tpu.memory_space<vmem>>, vector<1x128xf32>
    %12 = vector.broadcast %11 : vector<1x128xf32> to vector<128x128xf32>
    %13 = arith.addf %10, %12 : vector<128x128xf32>
    %cst_11 = arith.constant 0.000000e+00 : f32
    %14 = vector.broadcast %cst_11 : f32 to vector<128x128xf32>
    %15 = arith.maximumf %13, %14 : vector<128x128xf32>
    %16 = arith.truncf %15 : vector<128x128xf32> to vector<128x128xbf16>
    %c0_12 = arith.constant 0 : index
    %c0_13 = arith.constant 0 : index
    %17 = vector.load %arg6[%c0_12, %c0_13] : memref<128x128xbf16, #tpu.memory_space<vmem>>, vector<128x128xbf16>
    %cst_14 = arith.constant dense<0.000000e+00> : vector<128x128xf32>
    %18 = tpu.matmul %16, %17, %cst_14 {dimension_numbers = #tpu.dot_dimension_numbers<[1], [0], [0], [1], [0, 0, 1, 1], [], []>} : vector<128x128xbf16>, vector<128x128xbf16>, vector<128x128xf32> -> vector<128x128xf32>
    %c0_15 = arith.constant 0 : index
    %c0_16 = arith.constant 0 : index
    %19 = vector.load %arg7[%c0_15, %c0_16] : memref<1x128xf32, #tpu.memory_space<vmem>>, vector<1x128xf32>
    %20 = vector.broadcast %19 : vector<1x128xf32> to vector<128x128xf32>
    %21 = arith.addf %18, %20 : vector<128x128xf32>
    %cst_17 = arith.constant 0.000000e+00 : f32
    %22 = vector.broadcast %cst_17 : f32 to vector<128x128xf32>
    %23 = arith.maximumf %21, %22 : vector<128x128xf32>
    %24 = arith.truncf %23 : vector<128x128xf32> to vector<128x128xbf16>
    %c0_18 = arith.constant 0 : index
    %c0_19 = arith.constant 0 : index
    %25 = vector.load %arg8[%c0_18, %c0_19] : memref<128x16xbf16, #tpu.memory_space<vmem>>, vector<128x16xbf16>
    %cst_20 = arith.constant dense<0.000000e+00> : vector<128x16xf32>
    %26 = tpu.matmul %24, %25, %cst_20 {dimension_numbers = #tpu.dot_dimension_numbers<[1], [0], [0], [1], [0, 0, 1, 1], [], []>} : vector<128x128xbf16>, vector<128x16xbf16>, vector<128x16xf32> -> vector<128x16xf32>
    %c0_21 = arith.constant 0 : index
    %c0_22 = arith.constant 0 : index
    %27 = vector.load %arg9[%c0_21, %c0_22] : memref<1x16xf32, #tpu.memory_space<vmem>>, vector<1x16xf32>
    %28 = vector.broadcast %27 : vector<1x16xf32> to vector<128x16xf32>
    %29 = arith.addf %26, %28 : vector<128x16xf32>
    %c0_23 = arith.constant 0 : index
    %c0_24 = arith.constant 0 : index
    %30 = vector.load %arg10[%c0_23, %c0_24] : memref<128x16xf32, #tpu.memory_space<vmem>>, vector<128x16xf32>
    tpu.vector_store %arg10[%c0_23, %c0_24], %29 {strides = array<i32>} : memref<128x16xf32, #tpu.memory_space<vmem>>, vector<128x16xf32>,
    return
  }
  func.func @transform_0(%arg0: i32) -> (i32, i32) {
    %c0_i32 = arith.constant 0 : i32
    %c0_i32_0 = arith.constant 0 : i32
    return %arg0, %c0_i32 : i32, i32
  }
  func.func @transform_1(%arg0: i32) -> (i32, i32) {
    %c0_i32 = arith.constant 0 : i32
    %c0_i32_0 = arith.constant 0 : i32
    %c0_i32_1 = arith.constant 0 : i32
    return %c0_i32, %c0_i32_0 : i32, i32
  }
  func.func @transform_2(%arg0: i32) -> (i32, i32) {
    %c0_i32 = arith.constant 0 : i32
    %c0_i32_0 = arith.constant 0 : i32
    %c0_i32_1 = arith.constant 0 : i32
    return %c0_i32, %c0_i32_0 : i32, i32
  }
  func.func @transform_3(%arg0: i32) -> (i32, i32) {
    %c0_i32 = arith.constant 0 : i32
    %c0_i32_0 = arith.constant 0 : i32
    %c0_i32_1 = arith.constant 0 : i32
    return %c0_i32, %c0_i32_0 : i32, i32
  }
  func.func @transform_4(%arg0: i32) -> (i32, i32) {
    %c0_i32 = arith.constant 0 : i32
    %c0_i32_0 = arith.constant 0 : i32
    %c0_i32_1 = arith.constant 0 : i32
    return %c0_i32, %c0_i32_0 : i32, i32
  }
  func.func @transform_5(%arg0: i32) -> (i32, i32) {
    %c0_i32 = arith.constant 0 : i32
    %c0_i32_0 = arith.constant 0 : i32
    %c0_i32_1 = arith.constant 0 : i32
    return %c0_i32, %c0_i32_0 : i32, i32
  }
  func.func @transform_6(%arg0: i32) -> (i32, i32) {
    %c0_i32 = arith.constant 0 : i32
    %c0_i32_0 = arith.constant 0 : i32
    %c0_i32_1 = arith.constant 0 : i32
    return %c0_i32, %c0_i32_0 : i32, i32
  }
  func.func @transform_7(%arg0: i32) -> (i32, i32) {
    %c0_i32 = arith.constant 0 : i32
    %c0_i32_0 = arith.constant 0 : i32
    %c0_i32_1 = arith.constant 0 : i32
    return %c0_i32, %c0_i32_0 : i32, i32
  }
  func.func @transform_8(%arg0: i32) -> (i32, i32) {
    %c0_i32 = arith.constant 0 : i32
    %c0_i32_0 = arith.constant 0 : i32
    %c0_i32_1 = arith.constant 0 : i32
    return %c0_i32, %c0_i32_0 : i32, i32
  }
  func.func @transform_9(%arg0: i32) -> (i32, i32) {
    %c0_i32 = arith.constant 0 : i32
    %c0_i32_0 = arith.constant 0 : i32
    return %arg0, %c0_i32 : i32, i32
  }
}

</mosaic_0001>

<bundles_post_ra>
// kernel: tpu_custom_call.1
= control target key start
LH: loop header
LB: loop body
LE: loop exit
PB: predicated region body
PF: predicated region fallthrough
CT: control target
= control target key end

     0   :  { %14 = vsyncpa [#allocation3], 0  ;;  %s1072_s12 = smov [#allocation2]   ;;  %s1073_s14 = smov 256   ;;  %s1434_s0 = inlined_call_operand.vmem [shape: f32[128,11], index: 0, kind: input, shape index: {}]   ;;  %s1435_s1 = inlined_call_operand.hbm [shape: f32[11,256], index: 1, kind: input, shape index: {}]   ;;  %s1436_s2 = inlined_call_operand.vmem [shape: f32[1,256], index: 2, kind: input, shape index: {}]   ;;  %s1437_s3 = inlined_call_operand.vmem [shape: bf16[256,128], index: 3, kind: input, shape index: {}]   ;;  %s1438_s4 = inlined_call_operand.vmem [shape: f32[1,128], index: 4, kind: input, shape index: {}]   ;;  %s1439_s5 = inlined_call_operand.vmem [shape: bf16[128,128], index: 5, kind: input, shape index: {}]   ;;  %s1440_s6 = inlined_call_operand.vmem [shape: f32[1,128], index: 6, kind: input, shape index: {}]   ;;  %s1441_s7 = inlined_call_operand.vmem [shape: bf16[128,16], index: 7, kind: input, shape index: {}]   ;;  %s1442_s8 = inlined_call_operand.vmem [shape: f32[1,16], index: 8, kind: input, shape index: {}]   ;;  %s1443_s9 = inlined_call_operand.vmem [shape: f32[128,16], index: 9, kind: output, shape index: {}]  }
   0x1   :  { %s21_s11 = sshll.u32 %s1435_s1, 4  ;;  %s23_s13 = sshll.u32 %s1072_s12, 4  ;;  %s22_s11 = int_to_ptr.hbm [resolvable:$true] %s21_s11  ;;  %s24_s13 = int_to_ptr.vmem [resolvable:$true] %s23_s13 }
   0x2   :  { %s1074_s15 = smov 16  }
   0x3   :  { %29 = dma.hbm_to_vmem [thread:$0]  %s22_s11, 512, %s24_s13, [#allocation3], %s1073_s14, %s1073_s14, %s1074_s15  }
   0x4   :  { %1070 = dma.done.wait [#allocation3], 512  }
   0x5   :  { %1071 = vsyncadd [#allocation3], 4294966784  ;;  %vm123_vm0 = vcmask 1042432   ;;  %v66_v0 = vld [vmem:[#allocation2 + $0x10] sm:$0x7]  ;;  %v64_v2 = vld [vmem:[#allocation2] sm:$0xff] }
   0x6   :  { %v67_v1 = vld [vmem:[#allocation2 + $0x18] sm:$0x7]  ;;  %842 = vmatpush.msk.msra.mxu0 %vm123_vm0, %v66_v0  ;;  %v65_v3 = vld [vmem:[#allocation2 + $0x8] sm:$0xff]  ;;  %v48_v4 = vld [vmem:[%s1434_s0] sm:$0xff]  ;;  %vm74_vm1 = vcmask 89088   ;;  %1036 = vmatpush.msk.msra.mxu2 %vm123_vm0, %v66_v0  ;;  %vm820_vm2 = vcmask 130048  }
   0x7   :  { %859 = vmatpush.msk.msra.mxu1 %vm123_vm0, %v67_v1  ;;  %1038 = vmatpush.msk.msra.mxu3 %vm123_vm0, %v67_v1  ;;  %v49_v5 = vld [vmem:[%s1434_s0 + $0x8] sm:$0xff]  ;;  %v50_v6 = vld [vmem:[%s1434_s0 + $0x10] sm:$0xff]  ;;  %v56_v7 = vld [vmem:[%s1434_s0 + $0x40] sm:$0xff] }
   0x8   :  { %145 = vmatpush.msra.mxu0 %v64_v2  ;;  %1037 = vmatpush.msra.mxu2 %v64_v2  ;;  %v51_v8 = vld [vmem:[%s1434_s0 + $0x18] sm:$0xff]  ;;  %v57_v9 = vld [vmem:[%s1434_s0 + $0x48] sm:$0xff]  ;;  %v52_v10 = vld [vmem:[%s1434_s0 + $0x20] sm:$0xff] }
   0x9   :  { %210 = vmatpush.msra.mxu1 %v65_v3  ;;  %843 = vmatmul.msk.f32.vlgmr.msra.gmra.mxu0 %vm74_vm1, %v48_v4  ;;  %v58_v11 = vld [vmem:[%s1434_s0 + $0x50] sm:$0xff]  ;;  %v1019_v12 = vld [vmem:[%s1437_s3 + $0x78] sm:$0xff]  ;;  %v53_v16 = vld [vmem:[%s1434_s0 + $0x28] sm:$0xff] }
   0xa   :  { %860 = vmatmul.msk.f32.vlgmr.msra.gmra.mxu1 %vm74_vm1, %v48_v4  ;;  %1039 = vmatpush.msra.mxu3 %v65_v3  ;;  %v1011_v13 = vld [vmem:[%s1437_s3 + $0x38] sm:$0xff]  ;;  %v1018_v14 = vld [vmem:[%s1437_s3 + $0x70] sm:$0xff]  ;;  %v1017_v18 = vld [vmem:[%s1437_s3 + $0x68] sm:$0xff] }
   0xb   :  { %868 = vmatmul.msk.f32.vlgmr.msra.gmra.mxu3 %vm74_vm1, %v56_v7  ;;  %852 = vmatmul.msk.f32.vlgmr.msra.gmra.mxu2 %vm74_vm1, %v57_v9  ;;  %v1010_v15 = vld [vmem:[%s1437_s3 + $0x30] sm:$0xff]  ;;  %v59_v17 = vld [vmem:[%s1434_s0 + $0x58] sm:$0xff]  ;;  %v1009_v19 = vld [vmem:[%s1437_s3 + $0x28] sm:$0xff] }
   0xc   :  { %489 = vmatpush.bf16.msrb.mxu3 %v1019_v12  ;;  %440 = vmatpush.bf16.msrb.mxu2 %v1011_v13  ;;  %v1016_v20 = vld [vmem:[%s1437_s3 + $0x60] sm:$0xff]  ;;  %v54_v22 = vld [vmem:[%s1434_s0 + $0x30] sm:$0xff]  ;;  %v1015_v24 = vld [vmem:[%s1437_s3 + $0x58] sm:$0xff] }
   0xd   :  { %v1008_v21 = vld [vmem:[%s1437_s3 + $0x20] sm:$0xff]  ;;  %v1007_v25 = vld [vmem:[%s1437_s3 + $0x18] sm:$0xff]  ;;  %v1014_v26 = vld [vmem:[%s1437_s3 + $0x50] sm:$0xff] }
   0xe   :  { %v60_v23 = vld [vmem:[%s1434_s0 + $0x60] sm:$0xff]  ;;  %v1006_v27 = vld [vmem:[%s1437_s3 + $0x10] sm:$0xff]  ;;  %v55_v28 = vld [vmem:[%s1434_s0 + $0x38] sm:$0xff] }
   0xf   :  { %v61_v29 = vld [vmem:[%s1434_s0 + $0x68] sm:$0xff]  ;;  %v62_v30 = vld [vmem:[%s1434_s0 + $0x70] sm:$0xff]  ;;  %v63_v31 = vld [vmem:[%s1434_s0 + $0x78] sm:$0xff] }
  0x10   :  { %490 = vmatpush.bf16.msrb.mxu3 %v1018_v14  ;;  %441 = vmatpush.bf16.msrb.mxu2 %v1010_v15  ;;  %v1005_v32 = vld [vmem:[%s1437_s3 + $0x8] sm:$0xff]  ;;  %v1004_v34 = vld [vmem:[%s1437_s3] sm:$0xff] }
  0x11   :  { %844 = vmatmul.msk.f32.gmra.mxu0 %vm74_vm1, %v49_v5  ;;  %v1013_v33 = vld [vmem:[%s1437_s3 + $0x48] sm:$0xff]  ;;  %v1012_v35 = vld [vmem:[%s1437_s3 + $0x40] sm:$0xff] }
  0x12   :  { %861 = vmatmul.msk.f32.gmra.mxu1 %vm74_vm1, %v49_v5  ;;  %v68_v36 = vld [vmem:[%s1436_s2] sm:$0x3] }
  0x13   :  { %869 = vmatmul.msk.f32.gmra.mxu3 %vm74_vm1, %v57_v9  ;;  %853 = vmatmul.msk.f32.gmra.mxu2 %vm74_vm1, %v58_v11  ;;  %v1259_v39 = vperm.slane %v68_v36, 0  ;;  %v1261_v40 = vperm.slane %v68_v36, 1  ;;  %v1026_v36 = vld [vmem:[%s1439_s5 + $0x30] sm:$0xff] }
  0x14   :  { %491 = vmatpush.bf16.msrb.mxu3 %v1017_v18  ;;  %442 = vmatpush.bf16.msrb.mxu2 %v1009_v19  ;;  %v1027_v18 = vld [vmem:[%s1439_s5 + $0x38] sm:$0xff] }
  0x15   :  { %630 = vmatpush.bf16.msrb.mxu0 %v1027_v18 }
  0x18   :  { %492 = vmatpush.bf16.msrb.mxu3 %v1016_v20  ;;  %443 = vmatpush.bf16.msrb.mxu2 %v1008_v21 }
  0x19   :  { %845 = vmatmul.msk.f32.gmra.mxu0 %vm74_vm1, %v50_v6 }
  0x1a   :  { %862 = vmatmul.msk.f32.gmra.mxu1 %vm74_vm1, %v50_v6  ;;  %631 = vmatpush.bf16.msrb.mxu0 %v1026_v36 }
  0x1b   :  { %870 = vmatmul.msk.f32.gmra.mxu3 %vm74_vm1, %v58_v11  ;;  %854 = vmatmul.msk.f32.gmra.mxu2 %vm74_vm1, %v59_v17 }
  0x1c   :  { %493 = vmatpush.bf16.msrb.mxu3 %v1015_v24  ;;  %444 = vmatpush.bf16.msrb.mxu2 %v1007_v25 }
  0x20   :  { %494 = vmatpush.bf16.msrb.mxu3 %v1014_v26  ;;  %445 = vmatpush.bf16.msrb.mxu2 %v1006_v27 }
  0x21   :  { %846 = vmatmul.msk.f32.gmra.mxu0 %vm74_vm1, %v51_v8 }
  0x22   :  { %863 = vmatmul.msk.f32.gmra.mxu1 %vm74_vm1, %v51_v8 }
  0x23   :  { %871 = vmatmul.msk.f32.gmra.mxu3 %vm74_vm1, %v59_v17  ;;  %855 = vmatmul.msk.f32.gmra.mxu2 %vm74_vm1, %v60_v23 }
  0x24   :  { %446 = vmatpush.bf16.msrb.mxu2 %v1005_v32  ;;  %495 = vmatpush.bf16.msrb.mxu3 %v1013_v33 }
  0x28   :  { %447 = vmatpush.bf16.msrb.mxu2 %v1004_v34  ;;  %496 = vmatpush.bf16.msrb.mxu3 %v1012_v35 }
  0x29   :  { %847 = vmatmul.msk.f32.gmra.mxu0 %vm74_vm1, %v52_v10 }
  0x2a   :  { %864 = vmatmul.msk.f32.gmra.mxu1 %vm74_vm1, %v52_v10 }
  0x2b   :  { %872 = vmatmul.msk.f32.gmra.mxu3 %vm74_vm1, %v60_v23  ;;  %856 = vmatmul.msk.f32.gmra.mxu2 %vm74_vm1, %v61_v29 }
  0x31   :  { %848 = vmatmul.msk.f32.gmra.mxu0 %vm74_vm1, %v53_v16 }
  0x32   :  { %865 = vmatmul.msk.f32.gmra.mxu1 %vm74_vm1, %v53_v16 }
  0x33   :  { %873 = vmatmul.msk.f32.gmra.mxu3 %vm74_vm1, %v61_v29  ;;  %857 = vmatmul.msk.f32.gmra.mxu2 %vm74_vm1, %v62_v30 }
  0x39   :  { %849 = vmatmul.msk.f32.gmra.mxu0 %vm74_vm1, %v54_v22 }
  0x3a   :  { %866 = vmatmul.msk.f32.gmra.mxu1 %vm74_vm1, %v54_v22 }
  0x3b   :  { %874 = vmatmul.msk.f32.gmra.mxu3 %vm74_vm1, %v62_v30  ;;  %858 = vmatmul.msk.f32.gmra.mxu2 %vm74_vm1, %v63_v31 }
  0x41   :  { %850 = vmatmul.msk.f32.gmra.mxu0 %vm74_vm1, %v55_v28 }
  0x42   :  { %867 = vmatmul.msk.f32.gmra.mxu1 %vm74_vm1, %v55_v28 }
  0x43   :  { %875 = vmatmul.msk.f32.gmra.mxu3 %vm74_vm1, %v63_v31 }
  0x49   :  { %851 = vmatmul.msk.f32.gmra.mxu0 %vm74_vm1, %v56_v7 }
  0x86   :  { %v147_v37 = vpop.f32.mrf.mxu0 }
  0x87   :  { %v212_v38 = vpop.f32.mrf.mxu1  ;;  %v148_v41 = vadd.f32 %v147_v37, %v1259_v39 }
  0x88   :  { %v213_v42 = vadd.f32 %v212_v38, %v1261_v40 }
  0x89   :  { %v260_v47 = vmax.f32 %v148_v41, 0.0  ;;  %v1025_v41 = vld [vmem:[%s1439_s5 + $0x28] sm:$0xff] }
  0x8a   :  { %v261_v48 = vmax.f32 %v213_v42, 0.0  ;;  %632 = vmatpush.bf16.msrb.mxu0 %v1025_v41 }
  0x8e   :  { %v150_v43 = vpop.f32.mrf.mxu0  ;;  %v236_v15 = vpop.f32.mrf.mxu3 }
  0x8f   :  { %v215_v44 = vpop.f32.mrf.mxu1  ;;  %v151_v45 = vadd.f32 %v150_v43, %v1259_v39  ;;  %v174_v21 = vpop.f32.mrf.mxu2 }
  0x90   :  { %v216_v46 = vadd.f32 %v215_v44, %v1261_v40  ;;  %v175_v42 = vadd.f32 %v174_v21, %v1259_v39  ;;  %v237_v44 = vadd.f32 %v236_v15, %v1261_v40 }
  0x91   :  { %v262_v49 = vmax.f32 %v151_v45, 0.0 }
  0x92   :  { %v263_v50 = vmax.f32 %v216_v46, 0.0  ;;  %v278_v46 = vmax.f32 %v175_v42, 0.0 }
  0x93   :  { %v292_v51 = vpack.c.bf16 %v262_v49, %v260_v47 }
  0x94   :  { %v293_v52 = vpack.c.bf16 %v263_v50, %v261_v48  ;;  %v277_v48 = vmax.f32 %v237_v44, 0.0 }
  0x95   :  { %448 = vmatmul.bf16.vlgmr.msrb.gmra.mxu2 %v292_v51 }
  0x96   :  { %497 = vmatmul.bf16.vlgmr.msrb.gmra.mxu3 %v293_v52  ;;  %v153_v53 = vpop.f32.mrf.mxu0  ;;  %v239_v22 = vpop.f32.mrf.mxu3 }
  0x97   :  { %v218_v54 = vpop.f32.mrf.mxu1  ;;  %v154_v55 = vadd.f32 %v153_v53, %v1259_v39  ;;  %v177_v35 = vpop.f32.mrf.mxu2  ;;  %v240_v45 = vadd.f32 %v239_v22, %v1261_v40 }
  0x98   :  { %v219_v56 = vadd.f32 %v218_v54, %v1261_v40  ;;  %v1024_v54 = vld [vmem:[%s1439_s5 + $0x20] sm:$0xff] }
  0x99   :  { %v264_v61 = vmax.f32 %v154_v55, 0.0  ;;  %v279_v49 = vmax.f32 %v240_v45, 0.0  ;;  %633 = vmatpush.bf16.msrb.mxu0 %v1024_v54 }
  0x9a   :  { %v265_v62 = vmax.f32 %v219_v56, 0.0 }
  0x9b   :  { %v301_v53 = vpack.c.bf16 %v279_v49, %v277_v48 }
  0x9e   :  { %v156_v57 = vpop.f32.mrf.mxu0  ;;  %v242_v38 = vpop.f32.mrf.mxu3 }
  0x9f   :  { %v221_v58 = vpop.f32.mrf.mxu1  ;;  %v157_v59 = vadd.f32 %v156_v57, %v1259_v39  ;;  %v180_v50 = vpop.f32.mrf.mxu2  ;;  %v178_v57 = vadd.f32 %v177_v35, %v1259_v39 }
  0xa0   :  { %v222_v60 = vadd.f32 %v221_v58, %v1261_v40  ;;  %v243_v58 = vadd.f32 %v242_v38, %v1261_v40 }
  0xa1   :  { %v266_v63 = vmax.f32 %v157_v59, 0.0  ;;  %v181_v59 = vadd.f32 %v180_v50, %v1259_v39 }
  0xa2   :  { %v267_v0 = vmax.f32 %v222_v60, 0.0 }
  0xa3   :  { %v294_v1 = vpack.c.bf16 %v266_v63, %v264_v61  ;;  %v280_v61 = vmax.f32 %v178_v57, 0.0  ;;  %v282_v63 = vmax.f32 %v181_v59, 0.0 }
  0xa4   :  { %v295_v2 = vpack.c.bf16 %v267_v0, %v265_v62  ;;  %v281_v62 = vmax.f32 %v243_v58, 0.0 }
  0xa5   :  { %453 = vmatmul.bf16.gmra.mxu2 %v294_v1  ;;  %v302_v1 = vpack.c.bf16 %v282_v63, %v280_v61 }
  0xa6   :  { %502 = vmatmul.bf16.gmra.mxu3 %v295_v2  ;;  %v159_v3 = vpop.f32.mrf.mxu0  ;;  %v245_v51 = vpop.f32.mrf.mxu3 }
  0xa7   :  { %v224_v4 = vpop.f32.mrf.mxu1  ;;  %v160_v5 = vadd.f32 %v159_v3, %v1259_v39  ;;  %v183_v55 = vpop.f32.mrf.mxu2  ;;  %v246_v60 = vadd.f32 %v245_v51, %v1261_v40 }
  0xa8   :  { %v225_v6 = vadd.f32 %v224_v4, %v1261_v40 }
  0xa9   :  { %v268_v11 = vmax.f32 %v160_v5, 0.0  ;;  %v283_v0 = vmax.f32 %v246_v60, 0.0  ;;  %v1023_v5 = vld [vmem:[%s1439_s5 + $0x18] sm:$0xff] }
  0xaa   :  { %v269_v12 = vmax.f32 %v225_v6, 0.0  ;;  %634 = vmatpush.bf16.msrb.mxu0 %v1023_v5  ;;  %v1022_v6 = vld [vmem:[%s1439_s5 + $0x10] sm:$0xff] }
  0xab   :  { %v303_v2 = vpack.c.bf16 %v283_v0, %v281_v62 }
  0xae   :  { %v162_v7 = vpop.f32.mrf.mxu0  ;;  %v248_v56 = vpop.f32.mrf.mxu3  ;;  %635 = vmatpush.bf16.msrb.mxu0 %v1022_v6 }
  0xaf   :  { %v227_v8 = vpop.f32.mrf.mxu1  ;;  %v163_v9 = vadd.f32 %v162_v7, %v1259_v39  ;;  %v186_v3 = vpop.f32.mrf.mxu2  ;;  %v184_v7 = vadd.f32 %v183_v55, %v1259_v39 }
  0xb0   :  { %v228_v10 = vadd.f32 %v227_v8, %v1261_v40  ;;  %v249_v8 = vadd.f32 %v248_v56, %v1261_v40 }
  0xb1   :  { %v270_v13 = vmax.f32 %v163_v9, 0.0  ;;  %v187_v9 = vadd.f32 %v186_v3, %v1259_v39 }
  0xb2   :  { %v271_v14 = vmax.f32 %v228_v10, 0.0  ;;  %v285_v15 = vmax.f32 %v249_v8, 0.0 }
  0xb3   :  { %v296_v16 = vpack.c.bf16 %v270_v13, %v268_v11  ;;  %v1021_v11 = vld [vmem:[%s1439_s5 + $0x8] sm:$0xff] }
  0xb4   :  { %v297_v17 = vpack.c.bf16 %v271_v14, %v269_v12  ;;  %v284_v14 = vmax.f32 %v184_v7, 0.0  ;;  %636 = vmatpush.bf16.msrb.mxu0 %v1021_v11 }
  0xb5   :  { %458 = vmatmul.bf16.gmra.mxu2 %v296_v16  ;;  %v286_v16 = vmax.f32 %v187_v9, 0.0 }
  0xb6   :  { %507 = vmatmul.bf16.gmra.mxu3 %v297_v17  ;;  %v165_v19 = vpop.f32.mrf.mxu0  ;;  %v251_v4 = vpop.f32.mrf.mxu3 }
  0xb7   :  { %v230_v20 = vpop.f32.mrf.mxu1  ;;  %v166_v23 = vadd.f32 %v165_v19, %v1259_v39  ;;  %v252_v10 = vadd.f32 %v251_v4, %v1261_v40  ;;  %v189_v12 = vpop.f32.mrf.mxu2  ;;  %v304_v18 = vpack.c.bf16 %v286_v16, %v284_v14 }
  0xb8   :  { %v231_v24 = vadd.f32 %v230_v20, %v1261_v40  ;;  %v190_v22 = vadd.f32 %v189_v12, %v1259_v39 }
  0xb9   :  { %v272_v29 = vmax.f32 %v166_v23, 0.0  ;;  %v287_v17 = vmax.f32 %v252_v10, 0.0 }
  0xba   :  { %v273_v30 = vmax.f32 %v231_v24, 0.0 }
  0xbb   :  { %v305_v19 = vpack.c.bf16 %v287_v17, %v285_v15 }
  0xbe   :  { %v168_v25 = vpop.f32.mrf.mxu0  ;;  %v254_v13 = vpop.f32.mrf.mxu3 }
  0xbf   :  { %v233_v26 = vpop.f32.mrf.mxu1  ;;  %v169_v27 = vadd.f32 %v168_v25, %v1259_v39  ;;  %v192_v20 = vpop.f32.mrf.mxu2  ;;  %v255_v23 = vadd.f32 %v254_v13, %v1261_v40  ;;  %v1035_v13 = vld [vmem:[%s1441_s7 + $0x38] sm:$0xff] }
  0xc0   :  { %v234_v28 = vadd.f32 %v233_v26, %v1261_v40  ;;  %v193_v24 = vadd.f32 %v192_v20, %v1259_v39  ;;  %v288_v26 = vmax.f32 %v190_v22, 0.0  ;;  %771 = vmatpush.bf16.msrb.mxu1 %v1035_v13 }
  0xc1   :  { %v274_v31 = vmax.f32 %v169_v27, 0.0  ;;  %v289_v27 = vmax.f32 %v255_v23, 0.0 }
  0xc2   :  { %v275_v32 = vmax.f32 %v234_v28, 0.0  ;;  %v290_v28 = vmax.f32 %v193_v24, 0.0 }
  0xc3   :  { %v298_v33 = vpack.c.bf16 %v274_v31, %v272_v29 }
  0xc4   :  { %v299_v34 = vpack.c.bf16 %v275_v32, %v273_v30  ;;  %v306_v30 = vpack.c.bf16 %v290_v28, %v288_v26  ;;  %v1020_v32 = vld [vmem:[%s1439_s5] sm:$0xff]  ;;  %v1033_v26 = vld [vmem:[%s1441_s7 + $0x28] sm:$0xff] }
  0xc5   :  { %463 = vmatmul.bf16.gmra.mxu2 %v298_v33  ;;  %637 = vmatpush.bf16.msrb.mxu0 %v1020_v32 }
  0xc6   :  { %512 = vmatmul.bf16.gmra.mxu3 %v299_v34  ;;  %v171_v37 = vpop.f32.mrf.mxu0  ;;  %v257_v21 = vpop.f32.mrf.mxu3 }
  0xc7   :  { %v172_v43 = vadd.f32 %v171_v37, %v1259_v39  ;;  %v258_v25 = vadd.f32 %v257_v21, %v1261_v40  ;;  %v1322_v39 = vld [vmem:[%s1438_s4] ss:$0 sm:$0xff] }
  0xc9   :  { %v276_v47 = vmax.f32 %v172_v43, 0.0  ;;  %v291_v29 = vmax.f32 %v258_v25, 0.0 }
  0xcb   :  { %v300_v52 = vpack.c.bf16 %v278_v46, %v276_v47  ;;  %v307_v31 = vpack.c.bf16 %v291_v29, %v289_v27 }
  0xd5   :  { %468 = vmatmul.bf16.gmra.mxu2 %v300_v52 }
  0xd6   :  { %517 = vmatmul.bf16.gmra.mxu3 %v301_v53 }
  0xe5   :  { %473 = vmatmul.bf16.gmra.mxu2 %v302_v1 }
  0xe6   :  { %522 = vmatmul.bf16.gmra.mxu3 %v303_v2 }
  0xf5   :  { %478 = vmatmul.bf16.gmra.mxu2 %v304_v18  ;;  %v1034_v18 = vld [vmem:[%s1441_s7 + $0x30] sm:$0xff] }
  0xf6   :  { %527 = vmatmul.bf16.gmra.mxu3 %v305_v19  ;;  %772 = vmatpush.bf16.msrb.mxu1 %v1034_v18 }
  0xfa   :  { %773 = vmatpush.bf16.msrb.mxu1 %v1033_v26 }
 0x105   :  { %483 = vmatmul.bf16.gmra.mxu2 %v306_v30 }
 0x106   :  { %532 = vmatmul.bf16.gmra.mxu3 %v307_v31  ;;  %v1032_v31 = vld [vmem:[%s1441_s7 + $0x20] sm:$0xff] }
 0x107   :  { %774 = vmatpush.bf16.msrb.mxu1 %v1032_v31 }
 0x118   :  { %v449_v33 = vpop.f32.mrf.mxu2 }
 0x119   :  { %v498_v34 = vpop.f32.mrf.mxu3  ;;  %v450_v40 = vadd.f32 %v1322_v39, %v449_v33 }
 0x11b   :  { %v499_v37 = vadd.f32 %v498_v34, %v450_v40 }
 0x11d   :  { %v538_v42 = vmax.f32 %v499_v37, 0.0 }
 0x120   :  { %v451_v35 = vpop.f32.mrf.mxu2 }
 0x121   :  { %v500_v36 = vpop.f32.mrf.mxu3  ;;  %v452_v38 = vadd.f32 %v1322_v39, %v451_v35 }
 0x123   :  { %v501_v41 = vadd.f32 %v500_v36, %v452_v38 }
 0x125   :  { %v539_v43 = vmax.f32 %v501_v41, 0.0  ;;  %v1031_v41 = vld [vmem:[%s1441_s7 + $0x18] sm:$0xff] }
 0x126   :  { %775 = vmatpush.bf16.msrb.mxu1 %v1031_v41 }
 0x127   :  { %v554_v44 = vpack.c.bf16 %v539_v43, %v538_v42 }
 0x128   :  { %v454_v45 = vpop.f32.mrf.mxu2 }
 0x129   :  { %v503_v46 = vpop.f32.mrf.mxu3  ;;  %638 = vmatmul.bf16.vlgmr.msrb.gmra.mxu0 %v554_v44  ;;  %v455_v47 = vadd.f32 %v1322_v39, %v454_v45  ;;  %v1030_v44 = vld [vmem:[%s1441_s7 + $0x10] sm:$0xff] }
 0x12a   :  { %776 = vmatpush.bf16.msrb.mxu1 %v1030_v44 }
 0x12b   :  { %v504_v50 = vadd.f32 %v503_v46, %v455_v47  ;;  %v1029_v46 = vld [vmem:[%s1441_s7 + $0x8] sm:$0xff] }
 0x12d   :  { %v540_v53 = vmax.f32 %v504_v50, 0.0 }
 0x12e   :  { %777 = vmatpush.bf16.msrb.mxu1 %v1029_v46 }
 0x130   :  { %v456_v48 = vpop.f32.mrf.mxu2 }
 0x131   :  { %v505_v49 = vpop.f32.mrf.mxu3  ;;  %v457_v51 = vadd.f32 %v1322_v39, %v456_v48 }
 0x133   :  { %v506_v52 = vadd.f32 %v505_v49, %v457_v51 }
 0x135   :  { %v541_v54 = vmax.f32 %v506_v52, 0.0 }
 0x137   :  { %v555_v55 = vpack.c.bf16 %v541_v54, %v540_v53 }
 0x138   :  { %v459_v56 = vpop.f32.mrf.mxu2 }
 0x139   :  { %v508_v57 = vpop.f32.mrf.mxu3  ;;  %643 = vmatmul.bf16.gmra.mxu0 %v555_v55  ;;  %v460_v58 = vadd.f32 %v1322_v39, %v459_v56 }
 0x13b   :  { %v509_v61 = vadd.f32 %v508_v57, %v460_v58  ;;  %v1028_v57 = vld [vmem:[%s1441_s7] sm:$0xff] }
 0x13c   :  { %778 = vmatpush.bf16.msrb.mxu1 %v1028_v57 }
 0x13d   :  { %v542_v0 = vmax.f32 %v509_v61, 0.0 }
 0x140   :  { %v461_v59 = vpop.f32.mrf.mxu2 }
 0x141   :  { %v510_v60 = vpop.f32.mrf.mxu3  ;;  %v462_v62 = vadd.f32 %v1322_v39, %v461_v59 }
 0x143   :  { %v511_v63 = vadd.f32 %v510_v60, %v462_v62 }
 0x145   :  { %v543_v1 = vmax.f32 %v511_v63, 0.0 }
 0x147   :  { %v556_v2 = vpack.c.bf16 %v543_v1, %v542_v0 }
 0x148   :  { %v464_v3 = vpop.f32.mrf.mxu2 }
 0x149   :  { %v513_v4 = vpop.f32.mrf.mxu3  ;;  %648 = vmatmul.bf16.gmra.mxu0 %v556_v2  ;;  %v465_v5 = vadd.f32 %v1322_v39, %v464_v3 }
 0x14b   :  { %v514_v8 = vadd.f32 %v513_v4, %v465_v5  ;;  %v1044_v4 = vld [vmem:[%s1440_s6] ss:$0 sm:$0xff] }
 0x14d   :  { %v544_v11 = vmax.f32 %v514_v8, 0.0 }
 0x150   :  { %v466_v6 = vpop.f32.mrf.mxu2 }
 0x151   :  { %v515_v7 = vpop.f32.mrf.mxu3  ;;  %v467_v9 = vadd.f32 %v1322_v39, %v466_v6 }
 0x153   :  { %v516_v10 = vadd.f32 %v515_v7, %v467_v9 }
 0x155   :  { %v545_v12 = vmax.f32 %v516_v10, 0.0 }
 0x157   :  { %v557_v14 = vpack.c.bf16 %v545_v12, %v544_v11 }
 0x158   :  { %v469_v15 = vpop.f32.mrf.mxu2 }
 0x159   :  { %v518_v16 = vpop.f32.mrf.mxu3  ;;  %653 = vmatmul.bf16.gmra.mxu0 %v557_v14  ;;  %v470_v17 = vadd.f32 %v1322_v39, %v469_v15 }
 0x15b   :  { %v519_v21 = vadd.f32 %v518_v16, %v470_v17 }
 0x15d   :  { %v546_v24 = vmax.f32 %v519_v21, 0.0 }
 0x160   :  { %v471_v19 = vpop.f32.mrf.mxu2 }
 0x161   :  { %v520_v20 = vpop.f32.mrf.mxu3  ;;  %v472_v22 = vadd.f32 %v1322_v39, %v471_v19 }
 0x163   :  { %v521_v23 = vadd.f32 %v520_v20, %v472_v22 }
 0x165   :  { %v547_v25 = vmax.f32 %v521_v23, 0.0 }
 0x167   :  { %v558_v27 = vpack.c.bf16 %v547_v25, %v546_v24 }
 0x168   :  { %v474_v28 = vpop.f32.mrf.mxu2 }
 0x169   :  { %v523_v29 = vpop.f32.mrf.mxu3  ;;  %658 = vmatmul.bf16.gmra.mxu0 %v558_v27  ;;  %v475_v30 = vadd.f32 %v1322_v39, %v474_v28 }
 0x16b   :  { %v524_v34 = vadd.f32 %v523_v29, %v475_v30 }
 0x16d   :  { %v548_v36 = vmax.f32 %v524_v34, 0.0 }
 0x170   :  { %v476_v32 = vpop.f32.mrf.mxu2 }
 0x171   :  { %v525_v33 = vpop.f32.mrf.mxu3  ;;  %v477_v40 = vadd.f32 %v1322_v39, %v476_v32 }
 0x173   :  { %v526_v35 = vadd.f32 %v525_v33, %v477_v40 }
 0x175   :  { %v549_v37 = vmax.f32 %v526_v35, 0.0 }
 0x177   :  { %v559_v38 = vpack.c.bf16 %v549_v37, %v548_v36 }
 0x178   :  { %v479_v42 = vpop.f32.mrf.mxu2 }
 0x179   :  { %v528_v43 = vpop.f32.mrf.mxu3  ;;  %663 = vmatmul.bf16.gmra.mxu0 %v559_v38  ;;  %v480_v45 = vadd.f32 %v1322_v39, %v479_v42 }
 0x17b   :  { %v529_v49 = vadd.f32 %v528_v43, %v480_v45 }
 0x17d   :  { %v550_v52 = vmax.f32 %v529_v49, 0.0 }
 0x180   :  { %v481_v47 = vpop.f32.mrf.mxu2 }
 0x181   :  { %v530_v48 = vpop.f32.mrf.mxu3  ;;  %v482_v50 = vadd.f32 %v1322_v39, %v481_v47 }
 0x183   :  { %v531_v51 = vadd.f32 %v530_v48, %v482_v50 }
 0x185   :  { %v551_v53 = vmax.f32 %v531_v51, 0.0 }
 0x187   :  { %v560_v54 = vpack.c.bf16 %v551_v53, %v550_v52 }
 0x188   :  { %v484_v55 = vpop.f32.mrf.mxu2 }
 0x189   :  { %v533_v56 = vpop.f32.mrf.mxu3  ;;  %668 = vmatmul.bf16.gmra.mxu0 %v560_v54  ;;  %v485_v58 = vadd.f32 %v1322_v39, %v484_v55 }
 0x18b   :  { %v534_v60 = vadd.f32 %v533_v56, %v485_v58 }
 0x18d   :  { %v552_v0 = vmax.f32 %v534_v60, 0.0  ;;  %v1045_v60 = vld [vmem:[%s1442_s8] ss:$0 sm:$0xff] }
 0x190   :  { %v486_v59 = vpop.f32.mrf.mxu2 }
 0x191   :  { %v487_v61 = vadd.f32 %v1322_v39, %v486_v59  ;;  %v535_v62 = vpop.f32.mrf.mxu3 }
 0x193   :  { %v536_v63 = vadd.f32 %v535_v62, %v487_v61 }
 0x195   :  { %v553_v1 = vmax.f32 %v536_v63, 0.0 }
 0x197   :  { %v561_v2 = vpack.c.bf16 %v553_v1, %v552_v0 }
 0x199   :  { %673 = vmatmul.bf16.gmra.mxu0 %v561_v2 }
 0x1a6   :  { %v639_v3 = vpop.f32.mrf.mxu0 }
 0x1a7   :  { %v640_v5 = vadd.f32 %v1044_v4, %v639_v3 }
 0x1a9   :  { %v679_v8 = vmax.f32 %v640_v5, 0.0 }
 0x1ae   :  { %v641_v6 = vpop.f32.mrf.mxu0 }
 0x1af   :  { %v642_v7 = vadd.f32 %v1044_v4, %v641_v6 }
 0x1b1   :  { %v680_v9 = vmax.f32 %v642_v7, 0.0 }
 0x1b3   :  { %v695_v10 = vpack.c.bf16 %v680_v9, %v679_v8 }
 0x1b5   :  { %779 = vmatmul.bf16.vlgmr.msrb.gmra.mxu1 %v695_v10 }
 0x1b6   :  { %v644_v11 = vpop.f32.mrf.mxu0 }
 0x1b7   :  { %v645_v39 = vadd.f32 %v1044_v4, %v644_v11 }
 0x1b9   :  { %v681_v14 = vmax.f32 %v645_v39, 0.0 }
 0x1be   :  { %v646_v12 = vpop.f32.mrf.mxu0 }
 0x1bf   :  { %v647_v13 = vadd.f32 %v1044_v4, %v646_v12 }
 0x1c1   :  { %v682_v15 = vmax.f32 %v647_v13, 0.0 }
 0x1c3   :  { %v696_v16 = vpack.c.bf16 %v682_v15, %v681_v14 }
 0x1c5   :  { %784 = vmatmul.bf16.gmra.mxu1 %v696_v16 }
 0x1c6   :  { %v649_v17 = vpop.f32.mrf.mxu0 }
 0x1c7   :  { %v650_v18 = vadd.f32 %v1044_v4, %v649_v17 }
 0x1c9   :  { %v683_v21 = vmax.f32 %v650_v18, 0.0 }
 0x1ce   :  { %v651_v19 = vpop.f32.mrf.mxu0 }
 0x1cf   :  { %v652_v20 = vadd.f32 %v1044_v4, %v651_v19 }
 0x1d1   :  { %v684_v22 = vmax.f32 %v652_v20, 0.0 }
 0x1d3   :  { %v697_v23 = vpack.c.bf16 %v684_v22, %v683_v21 }
 0x1d5   :  { %789 = vmatmul.bf16.gmra.mxu1 %v697_v23 }
 0x1d6   :  { %v654_v24 = vpop.f32.mrf.mxu0 }
 0x1d7   :  { %v655_v25 = vadd.f32 %v1044_v4, %v654_v24 }
 0x1d9   :  { %v685_v28 = vmax.f32 %v655_v25, 0.0 }
 0x1de   :  { %v656_v26 = vpop.f32.mrf.mxu0 }
 0x1df   :  { %v657_v27 = vadd.f32 %v1044_v4, %v656_v26 }
 0x1e1   :  { %v686_v29 = vmax.f32 %v657_v27, 0.0 }
 0x1e3   :  { %v698_v30 = vpack.c.bf16 %v686_v29, %v685_v28 }
 0x1e5   :  { %794 = vmatmul.bf16.gmra.mxu1 %v698_v30 }
 0x1e6   :  { %v659_v31 = vpop.f32.mrf.mxu0 }
 0x1e7   :  { %v660_v32 = vadd.f32 %v1044_v4, %v659_v31 }
 0x1e9   :  { %v687_v40 = vmax.f32 %v660_v32, 0.0 }
 0x1ee   :  { %v661_v33 = vpop.f32.mrf.mxu0 }
 0x1ef   :  { %v662_v34 = vadd.f32 %v1044_v4, %v661_v33 }
 0x1f1   :  { %v688_v35 = vmax.f32 %v662_v34, 0.0 }
 0x1f3   :  { %v699_v36 = vpack.c.bf16 %v688_v35, %v687_v40 }
 0x1f5   :  { %799 = vmatmul.bf16.gmra.mxu1 %v699_v36 }
 0x1f6   :  { %v664_v37 = vpop.f32.mrf.mxu0 }
 0x1f7   :  { %v665_v38 = vadd.f32 %v1044_v4, %v664_v37 }
 0x1f9   :  { %v689_v43 = vmax.f32 %v665_v38, 0.0 }
 0x1fe   :  { %v666_v41 = vpop.f32.mrf.mxu0 }
 0x1ff   :  { %v667_v42 = vadd.f32 %v1044_v4, %v666_v41 }
 0x201   :  { %v690_v44 = vmax.f32 %v667_v42, 0.0 }
 0x203   :  { %v700_v45 = vpack.c.bf16 %v690_v44, %v689_v43 }
 0x205   :  { %804 = vmatmul.bf16.gmra.mxu1 %v700_v45 }
 0x206   :  { %v669_v46 = vpop.f32.mrf.mxu0 }
 0x207   :  { %v670_v47 = vadd.f32 %v1044_v4, %v669_v46 }
 0x209   :  { %v691_v50 = vmax.f32 %v670_v47, 0.0 }
 0x20e   :  { %v671_v48 = vpop.f32.mrf.mxu0 }
 0x20f   :  { %v672_v49 = vadd.f32 %v1044_v4, %v671_v48 }
 0x211   :  { %v692_v51 = vmax.f32 %v672_v49, 0.0 }
 0x213   :  { %v701_v52 = vpack.c.bf16 %v692_v51, %v691_v50 }
 0x215   :  { %809 = vmatmul.bf16.gmra.mxu1 %v701_v52 }
 0x216   :  { %v674_v53 = vpop.f32.mrf.mxu0 }
 0x217   :  { %v675_v54 = vadd.f32 %v1044_v4, %v674_v53 }
 0x219   :  { %v693_v57 = vmax.f32 %v675_v54, 0.0 }
 0x21e   :  { %v676_v55 = vpop.f32.mrf.mxu0 }
 0x21f   :  { %v677_v56 = vadd.f32 %v1044_v4, %v676_v55 }
 0x221   :  { %v694_v58 = vmax.f32 %v677_v56, 0.0 }
 0x223   :  { %v702_v59 = vpack.c.bf16 %v694_v58, %v693_v57 }
 0x225   :  { %814 = vmatmul.bf16.gmra.mxu1 %v702_v59 }
 0x232   :  { %v780_v61 = vpop.f32.mrf.mxu1 }
 0x233   :  { %v781_v62 = vadd.f32 %v1045_v60, %v780_v61 }
 0x235   :  { %821 = vst.msk [vmem:[%s1443_s9] sm:$0xff] %vm820_vm2, %v781_v62 }
 0x23a   :  { %v782_v63 = vpop.f32.mrf.mxu1 }
 0x23b   :  { %v783_v0 = vadd.f32 %v1045_v60, %v782_v63 }
 0x23d   :  { %822 = vst.msk [vmem:[%s1443_s9 + $0x8] sm:$0xff] %vm820_vm2, %v783_v0 }
 0x242   :  { %v785_v1 = vpop.f32.mrf.mxu1 }
 0x243   :  { %v786_v2 = vadd.f32 %v1045_v60, %v785_v1 }
 0x245   :  { %823 = vst.msk [vmem:[%s1443_s9 + $0x10] sm:$0xff] %vm820_vm2, %v786_v2 }
 0x24a   :  { %v787_v3 = vpop.f32.mrf.mxu1 }
 0x24b   :  { %v788_v4 = vadd.f32 %v1045_v60, %v787_v3 }
 0x24d   :  { %824 = vst.msk [vmem:[%s1443_s9 + $0x18] sm:$0xff] %vm820_vm2, %v788_v4 }
 0x252   :  { %v790_v5 = vpop.f32.mrf.mxu1 }
 0x253   :  { %v791_v6 = vadd.f32 %v1045_v60, %v790_v5 }
 0x255   :  { %825 = vst.msk [vmem:[%s1443_s9 + $0x20] sm:$0xff] %vm820_vm2, %v791_v6 }
 0x25a   :  { %v792_v7 = vpop.f32.mrf.mxu1 }
 0x25b   :  { %v793_v8 = vadd.f32 %v1045_v60, %v792_v7 }
 0x25d   :  { %826 = vst.msk [vmem:[%s1443_s9 + $0x28] sm:$0xff] %vm820_vm2, %v793_v8 }
 0x262   :  { %v795_v9 = vpop.f32.mrf.mxu1 }
 0x263   :  { %v796_v10 = vadd.f32 %v1045_v60, %v795_v9 }
 0x265   :  { %827 = vst.msk [vmem:[%s1443_s9 + $0x30] sm:$0xff] %vm820_vm2, %v796_v10 }
 0x26a   :  { %v797_v11 = vpop.f32.mrf.mxu1 }
 0x26b   :  { %v798_v39 = vadd.f32 %v1045_v60, %v797_v11 }
 0x26d   :  { %828 = vst.msk [vmem:[%s1443_s9 + $0x38] sm:$0xff] %vm820_vm2, %v798_v39 }
 0x272   :  { %v800_v12 = vpop.f32.mrf.mxu1 }
 0x273   :  { %v801_v13 = vadd.f32 %v1045_v60, %v800_v12 }
 0x275   :  { %829 = vst.msk [vmem:[%s1443_s9 + $0x40] sm:$0xff] %vm820_vm2, %v801_v13 }
 0x27a   :  { %v802_v14 = vpop.f32.mrf.mxu1 }
 0x27b   :  { %v803_v15 = vadd.f32 %v1045_v60, %v802_v14 }
 0x27d   :  { %830 = vst.msk [vmem:[%s1443_s9 + $0x48] sm:$0xff] %vm820_vm2, %v803_v15 }
 0x282   :  { %v805_v16 = vpop.f32.mrf.mxu1 }
 0x283   :  { %v806_v17 = vadd.f32 %v1045_v60, %v805_v16 }
 0x285   :  { %831 = vst.msk [vmem:[%s1443_s9 + $0x50] sm:$0xff] %vm820_vm2, %v806_v17 }
 0x28a   :  { %v807_v18 = vpop.f32.mrf.mxu1 }
 0x28b   :  { %v808_v19 = vadd.f32 %v1045_v60, %v807_v18 }
 0x28d   :  { %832 = vst.msk [vmem:[%s1443_s9 + $0x58] sm:$0xff] %vm820_vm2, %v808_v19 }
 0x292   :  { %v810_v20 = vpop.f32.mrf.mxu1 }
 0x293   :  { %v811_v21 = vadd.f32 %v1045_v60, %v810_v20 }
 0x295   :  { %833 = vst.msk [vmem:[%s1443_s9 + $0x60] sm:$0xff] %vm820_vm2, %v811_v21 }
 0x29a   :  { %v812_v22 = vpop.f32.mrf.mxu1 }
 0x29b   :  { %v813_v23 = vadd.f32 %v1045_v60, %v812_v22 }
 0x29d   :  { %834 = vst.msk [vmem:[%s1443_s9 + $0x68] sm:$0xff] %vm820_vm2, %v813_v23 }
 0x2a2   :  { %v815_v24 = vpop.f32.mrf.mxu1 }
 0x2a3   :  { %v816_v25 = vadd.f32 %v1045_v60, %v815_v24 }
 0x2a5   :  { %835 = vst.msk [vmem:[%s1443_s9 + $0x70] sm:$0xff] %vm820_vm2, %v816_v25 }
 0x2aa   :  { %v817_v26 = vpop.f32.mrf.mxu1 }
 0x2ab   :  { %v818_v27 = vadd.f32 %v1045_v60, %v817_v26 }
 0x2ad   :  { %836 = vst.msk [vmem:[%s1443_s9 + $0x78] sm:$0xff] %vm820_vm2, %v818_v27 }
 0x2ae   :  { %841 = vsyncpa [#allocation3], 1 }

</bundles_post_ra>
